<compile_context>
chip_gen: v7x
topology: tpu7x:2x2x1
jax: 0.10.0
libtpu: 0.0.40
codegen_flags: <defaults>
</compile_context>

<pallas_src>
import jax
import jax.numpy as jnp
from jax.experimental import pallas as pl
from jax.experimental.pallas import tpu as pltpu

# ----------------------- config (cfg.* from the torch module) ----------------
INPUT_NEURONS = 32
HIDDEN_NEURONS = 64
OUTPUT_NEURONS = 16
BATCH = 8

LANE = 128
HID_PAD = ((HIDDEN_NEURONS + LANE - 1) // LANE) * LANE   # 64 -> 128

TILE_M = 1024          # batch tile for the gridded (huge-batch) path
GRIDLESS_MAX = 8192    # below this everything trivially fits VMEM: no grid


# ----------------------------- Pallas kernel --------------------------------
def mlp_kernel(x_ref, w1_ref, b1_ref, w2_ref, b2_ref, o_ref):
    # Cast input to bf16 inside the kernel (removes a standalone XLA convert).
    x = x_ref[...].astype(jnp.bfloat16)
    # First linear: bf16 operands, f32 accumulation on the MXU.
    h = jnp.dot(x, w1_ref[...], preferred_element_type=jnp.float32)
    # Bias + ReLU in f32 on the VPU.
    h = jnp.maximum(h + b1_ref[...], 0.0)
    # Second linear: cast activation to bf16 for the MXU, accumulate in f32.
    y = jnp.dot(h.astype(jnp.bfloat16), w2_ref[...],
                preferred_element_type=jnp.float32)
    o_ref[...] = (y + b2_ref[...]).astype(o_ref.dtype)


def _cost_estimate(batch):
    flops = (2 * batch * INPUT_NEURONS * HID_PAD
             + 2 * batch * HID_PAD * OUTPUT_NEURONS)
    bytes_accessed = (
        batch * INPUT_NEURONS * 4            # x (f32)
        + INPUT_NEURONS * HID_PAD * 2        # w1 (bf16)
        + HID_PAD * 4                        # b1 (f32)
        + HID_PAD * OUTPUT_NEURONS * 2       # w2 (bf16)
        + OUTPUT_NEURONS * 4                 # b2 (f32)
        + batch * OUTPUT_NEURONS * 4         # out (f32, un-padded)
    )
    return pl.CostEstimate(flops=flops, transcendentals=0,
                           bytes_accessed=bytes_accessed)


def prepare_params(w1, b1, w2, b2):
    """Pad the hidden dim to lane width (128) once; cast MXU operands to bf16.

    Zero padding preserves semantics: padded hidden cols get h = relu(0+0) = 0
    and the matching rows of the padded W2 are zero, so they contribute
    nothing.  The output dim (16) is left un-padded.
    """
    w1_p = jnp.zeros((INPUT_NEURONS, HID_PAD), jnp.bfloat16)
    w1_p = w1_p.at[:, :HIDDEN_NEURONS].set(w1.astype(jnp.bfloat16))
    b1_p = jnp.zeros((1, HID_PAD), jnp.float32)
    b1_p = b1_p.at[:, :HIDDEN_NEURONS].set(b1.astype(jnp.float32))
    w2_p = jnp.zeros((HID_PAD, OUTPUT_NEURONS), jnp.bfloat16)
    w2_p = w2_p.at[:HIDDEN_NEURONS, :].set(w2.astype(jnp.bfloat16))
    b2_p = b2.astype(jnp.float32).reshape(1, OUTPUT_NEURONS)
    return w1_p, b1_p, w2_p, b2_p


@jax.jit
def mlp_forward(x, w1_p, b1_p, w2_p, b2_p):
    """x: (B, INPUT_NEURONS) float.  Returns (B, OUTPUT_NEURONS) f32."""
    B = x.shape[0]
    x = x.astype(jnp.float32)

    if B <= GRIDLESS_MAX:
        # Small/medium batch: no grid, single invocation, everything in VMEM.
        vmem = pl.BlockSpec(memory_space=pltpu.MemorySpace.VMEM)
        return pl.pallas_call(
            mlp_kernel,
            out_shape=jax.ShapeDtypeStruct((B, OUTPUT_NEURONS), jnp.float32),
            in_specs=[vmem, vmem, vmem, vmem, vmem],
            out_specs=vmem,
            cost_estimate=_cost_estimate(B),
        )(x, w1_p, b1_p, w2_p, b2_p)

    # Huge batch: tile the batch axis, weights stay resident (index_map -> 0).
    # Ragged last tile is fine: rows are independent, so out-of-range rows of
    # the last block are either masked or recomputed identically by Pallas.
    grid = (pl.cdiv(B, TILE_M),)
    return pl.pallas_call(
        mlp_kernel,
        out_shape=jax.ShapeDtypeStruct((B, OUTPUT_NEURONS), jnp.float32),
        grid=grid,
        in_specs=[
            pl.BlockSpec((TILE_M, INPUT_NEURONS), lambda i: (i, 0)),
            pl.BlockSpec((INPUT_NEURONS, HID_PAD), lambda i: (0, 0)),
            pl.BlockSpec((1, HID_PAD), lambda i: (0, 0)),
            pl.BlockSpec((HID_PAD, OUTPUT_NEURONS), lambda i: (0, 0)),
            pl.BlockSpec((1, OUTPUT_NEURONS), lambda i: (0, 0)),
        ],
        out_specs=pl.BlockSpec((TILE_M, OUTPUT_NEURONS), lambda i: (i, 0)),
        compiler_params=pltpu.CompilerParams(
            dimension_semantics=("parallel",)),
        cost_estimate=_cost_estimate(B),
    )(x, w1_p, b1_p, w2_p, b2_p)


# --------------------------- parameter init ----------------------------------
def init_params(key):
    """Init mimicking torch.nn.Linear defaults (uniform +/- 1/sqrt(fan_in))."""
    k1, k2, k3, k4 = jax.random.split(key, 4)
    bound1 = 1.0 / jnp.sqrt(INPUT_NEURONS)
    bound2 = 1.0 / jnp.sqrt(HIDDEN_NEURONS)
    # stored as (in, out) = transpose of torch Linear.weight
    w1 = jax.random.uniform(k1, (INPUT_NEURONS, HIDDEN_NEURONS),
                            jnp.float32, -bound1, bound1)
    b1 = jax.random.uniform(k2, (1, HIDDEN_NEURONS),
                            jnp.float32, -bound1, bound1)
    w2 = jax.random.uniform(k3, (HIDDEN_NEURONS, OUTPUT_NEURONS),
                            jnp.float32, -bound2, bound2)
    b2 = jax.random.uniform(k4, (1, OUTPUT_NEURONS),
                            jnp.float32, -bound2, bound2)
    return w1, b1, w2, b2


def reference_forward(x, w1, b1, w2, b2):
    h = jnp.maximum(x @ w1 + b1, 0.0)
    return h @ w2 + b2


# TODO(synk): save_model/load_model (torch .pth file I/O) are not forward-pass
# ops and have no Pallas equivalent; omitted.

if __name__ == "__main__":
    key = jax.random.PRNGKey(0)
    kx, kp, kx2 = jax.random.split(key, 3)
    w1, b1, w2, b2 = init_params(kp)
    w1_p, b1_p, w2_p, b2_p = prepare_params(w1, b1, w2, b2)

    # --- small-batch (gridless) path ---
    x = jax.random.normal(kx, (BATCH, INPUT_NEURONS), jnp.float32)
    out = mlp_forward(x, w1_p, b1_p, w2_p, b2_p)
    out = jax.block_until_ready(out)
    ref = reference_forward(x, w1, b1, w2, b2)
    assert out.shape == (BATCH, OUTPUT_NEURONS)
    # bf16 MXU operands -> compare against f32 reference at bf16 tolerance
    assert jnp.allclose(out, ref, atol=3e-2, rtol=3e-2), "small-batch mismatch"

    # --- huge-batch (tiled, parallel, ragged last tile) path ---
    B2 = 9000  # > GRIDLESS_MAX and not a multiple of TILE_M
    x2 = jax.random.normal(kx2, (B2, INPUT_NEURONS), jnp.float32)
    out2 = mlp_forward(x2, w1_p, b1_p, w2_p, b2_p)
    out2 = jax.block_until_ready(out2)
    ref2 = reference_forward(x2, w1, b1, w2, b2)
    assert out2.shape == (B2, OUTPUT_NEURONS)
    assert jnp.allclose(out2, ref2, atol=3e-2, rtol=3e-2), "huge-batch mismatch"

    print("KERNEL_OK")
</pallas_src>

<mosaic_0001>
module attributes {stable_mosaic.version = 11 : i64} {
  func.func @mlp_kernel(%arg0: memref<8x32xf32, #tpu.memory_space<vmem>>, %arg1: memref<32x128xbf16, #tpu.memory_space<vmem>>, %arg2: memref<1x128xf32, #tpu.memory_space<vmem>>, %arg3: memref<128x16xbf16, #tpu.memory_space<vmem>>, %arg4: memref<1x16xf32, #tpu.memory_space<vmem>>, %arg5: memref<8x16xf32, #tpu.memory_space<vmem>>) attributes {dimension_semantics = [], scalar_prefetch = 0 : i64, scratch_operands = 0 : i64, tpu.core_type = #tpu.core_type<tc>} {
    %c0 = arith.constant 0 : index
    %c0_0 = arith.constant 0 : index
    %0 = vector.load %arg0[%c0, %c0_0] : memref<8x32xf32, #tpu.memory_space<vmem>>, vector<8x32xf32>
    %1 = arith.truncf %0 : vector<8x32xf32> to vector<8x32xbf16>
    %c0_1 = arith.constant 0 : index
    %c0_2 = arith.constant 0 : index
    %2 = vector.load %arg1[%c0_1, %c0_2] : memref<32x128xbf16, #tpu.memory_space<vmem>>, vector<32x128xbf16>
    %cst = arith.constant dense<0.000000e+00> : vector<8x128xf32>
    %3 = tpu.matmul %1, %2, %cst {dimension_numbers = #tpu.dot_dimension_numbers<[1], [0], [0], [1], [0, 0, 1, 1], [], []>} : vector<8x32xbf16>, vector<32x128xbf16>, vector<8x128xf32> -> vector<8x128xf32>
    %c0_3 = arith.constant 0 : index
    %c0_4 = arith.constant 0 : index
    %4 = vector.load %arg2[%c0_3, %c0_4] : memref<1x128xf32, #tpu.memory_space<vmem>>, vector<1x128xf32>
    %5 = vector.broadcast %4 : vector<1x128xf32> to vector<8x128xf32>
    %6 = arith.addf %3, %5 : vector<8x128xf32>
    %cst_5 = arith.constant 0.000000e+00 : f32
    %7 = vector.broadcast %cst_5 : f32 to vector<8x128xf32>
    %8 = arith.maximumf %6, %7 : vector<8x128xf32>
    %9 = arith.truncf %8 : vector<8x128xf32> to vector<8x128xbf16>
    %c0_6 = arith.constant 0 : index
    %c0_7 = arith.constant 0 : index
    %10 = vector.load %arg3[%c0_6, %c0_7] : memref<128x16xbf16, #tpu.memory_space<vmem>>, vector<128x16xbf16>
    %cst_8 = arith.constant dense<0.000000e+00> : vector<8x16xf32>
    %11 = tpu.matmul %9, %10, %cst_8 {dimension_numbers = #tpu.dot_dimension_numbers<[1], [0], [0], [1], [0, 0, 1, 1], [], []>} : vector<8x128xbf16>, vector<128x16xbf16>, vector<8x16xf32> -> vector<8x16xf32>
    %c0_9 = arith.constant 0 : index
    %c0_10 = arith.constant 0 : index
    %12 = vector.load %arg4[%c0_9, %c0_10] : memref<1x16xf32, #tpu.memory_space<vmem>>, vector<1x16xf32>
    %13 = vector.broadcast %12 : vector<1x16xf32> to vector<8x16xf32>
    %14 = arith.addf %11, %13 : vector<8x16xf32>
    %c0_11 = arith.constant 0 : index
    %c0_12 = arith.constant 0 : index
    %15 = vector.load %arg5[%c0_11, %c0_12] : memref<8x16xf32, #tpu.memory_space<vmem>>, vector<8x16xf32>
    tpu.vector_store %arg5[%c0_11, %c0_12], %14 {strides = array<i32>} : memref<8x16xf32, #tpu.memory_space<vmem>>, vector<8x16xf32>,
    return
  }
}

</mosaic_0001>

<bundles_post_ra>
// kernel: mlp_forward.1
= control target key start
LH: loop header
LB: loop body
LE: loop exit
PB: predicated region body
PF: predicated region fallthrough
CT: control target
= control target key end

     0   :  { %v310_v1 = vmov 0.0   ;;  %vm311_vm0 = vmmov 0   ;;  %vm47_vm1 = vcmask 261120   ;;  %s394_s0 = inlined_call_operand.vmem [shape: f32[8,32], index: 0, kind: input, shape index: {}]   ;;  %s395_s1 = inlined_call_operand.vmem [shape: bf16[32,128], index: 1, kind: input, shape index: {}]   ;;  %s396_s2 = inlined_call_operand.vmem [shape: f32[1,128], index: 2, kind: input, shape index: {}]   ;;  %s397_s3 = inlined_call_operand.vmem [shape: bf16[128,16], index: 3, kind: input, shape index: {}]   ;;  %s398_s4 = inlined_call_operand.vmem [shape: f32[1,16], index: 4, kind: input, shape index: {}]   ;;  %s399_s5 = inlined_call_operand.hbm [shape: f32[8,16], index: 5, kind: output, shape index: {}]  }
   0x1   :  { %v276_v0 = vld [vmem:[%s395_s1] sm:$0xff]   ;;  %245 = vmatprep.subr.bf16.mxu0 %v310_v1  ;;  %v277_v2 = vld [vmem:[%s395_s1 + $0x8] sm:$0xff]   ;;  %253 = vmatprep.subr.bf16.mxu1 %v310_v1  ;;  %v280_v7 = vld [vmem:[%s397_s3 + $0x10] sm:$0xff]  }
   0x2   :  { %246 = vmatpush3.bf16.msra.mxu0 %v276_v0  ;;  %249 = vmatprep.mubr.msk.bf16.mxu0 %vm311_vm0, %v310_v1  ;;  %v22_v3 = vld [vmem:[%s394_s0] sm:$0xff]  ;;  %v279_v6 = vld [vmem:[%s397_s3 + $0x8] sm:$0xff]  }
   0x3   :  { %247 = vmatprep.subr.bf16.mxu0 %v310_v1  ;;  %v278_v4 = vld [vmem:[%s397_s3] sm:$0xff]   ;;  %269 = vmatprep.mubr.msk.bf16.mxu1 %vm311_vm0, %v310_v1  ;;  %v23_v5 = vpack.c.bf16 %v22_v3, %v22_v3 }
   0x4   :  { %254 = vmatpush3.bf16.msra.mxu1 %v278_v4 }
   0x5   :  { %255 = vmatprep.subr.bf16.mxu1 %v310_v1 }
   0x6   :  { %248 = vmatpush3.bf16.msra.mxu0 %v277_v2 }
   0x8   :  { %256 = vmatpush3.bf16.msra.mxu1 %v279_v6 }
   0x9   :  { %250 = vmatmul.mubr.msk.bf16.vlgmr.msra.gmra.mrb[0].mxu0 %vm47_vm1, %v23_v5  ;;  %257 = vmatprep.subr.bf16.mxu1 %v310_v1 }
   0xa   :  { %10 = vsyncpa [#allocation3], 0  ;;  %v281_v8 = vld [vmem:[%s397_s3 + $0x18] sm:$0xff]   ;;  %v282_v9 = vld [vmem:[%s397_s3 + $0x20] sm:$0xff]   ;;  %s312_s17 = smov [#allocation2]   ;;  %vm204_vm2 = vcmask 130048  }
   0xb   :  { %v283_v10 = vld [vmem:[%s397_s3 + $0x28] sm:$0xff]   ;;  %v284_v11 = vld [vmem:[%s397_s3 + $0x30] sm:$0xff]   ;;  %v285_v12 = vld [vmem:[%s397_s3 + $0x38] sm:$0xff]   ;;  %s212_s18 = sshll.u32 %s312_s17, 4  ;;  %s213_s18 = int_to_ptr.vmem [resolvable:$true] %s212_s18 }
   0xc   :  { %258 = vmatpush3.bf16.msra.mxu1 %v280_v7  ;;  %v220_v13 = vld [vmem:[%s396_s2] ss:$0 sm:$0xff]  ;;  %s286_s2 = scalar_lea.vmem %s213_s18, 128  ;;  %p291_p1 = scmp.lt.s32.totalorder %s213_s18, %s213_s18 }
   0xd   :  { %259 = vmatprep.subr.bf16.mxu1 %v310_v1  ;;  %v224_v21 = vld [vmem:[%s398_s4] ss:$0 sm:$0xff]  ;;  %p287_p0 = scmp.ne.s32.totalorder %s213_s18, %s286_s2  ;;  %p292_p2 = scmp.lt.s32.totalorder %s286_s2, %s286_s2 }
   0xf   :  { %p293_p3 = por %p292_p2, %p291_p1 }
  0x10   :  { %260 = vmatpush3.bf16.msra.mxu1 %v281_v8 }
  0x11   :  { %261 = vmatprep.subr.bf16.mxu1 %v310_v1  ;;  %p294_p4 = pnand %p293_p3, %p287_p0 }
  0x14   :  { %262 = vmatpush3.bf16.msra.mxu1 %v282_v9 }
  0x15   :  { %263 = vmatprep.subr.bf16.mxu1 %v310_v1 }
  0x18   :  { %264 = vmatpush3.bf16.msra.mxu1 %v283_v10 }
  0x19   :  { %265 = vmatprep.subr.bf16.mxu1 %v310_v1 }
  0x1c   :  { %266 = vmatpush3.bf16.msra.mxu1 %v284_v11 }
  0x1d   :  { %267 = vmatprep.subr.bf16.mxu1 %v310_v1 }
  0x20   :  { %268 = vmatpush3.bf16.msra.mxu1 %v285_v12 }
  0xdc   :  { %v85_v14 = vpop.f32.mrb[0].mxu0 }
  0xdd   :  { %v86_v15 = vadd.f32 %v220_v13, %v85_v14  ;;  %v251_v16 = vpop.f32.mrb[1].mxu0 }
  0xde   :  { %v88_v17 = vpop.f32.mrb[2].mxu0 }
  0xdf   :  { %v91_v18 = vmax.f32 %v86_v15, 0.0  ;;  %v252_v19 = vpop.f32.mrb[3].mxu0 }
  0xe1   :  { %v92_v20 = vpack.c.bf16 %v91_v18, %v91_v18 }
  0xe3   :  { %270 = vmatmul.mubr.bf16.vlgmr.msra.gmra.mrb[0].mxu1 %v92_v20 }
 0x1b6   :  { %v198_v22 = vpop.f32.mrb[0].mxu1 }
 0x1b7   :  { %v199_v23 = vadd.f32 %v224_v21, %v198_v22  ;;  %v271_v24 = vpop.f32.mrb[1].mxu1 }
 0x1b8   :  { %v201_v25 = vpop.f32.mrb[2].mxu1 }
 0x1b9   :  { %v272_v26 = vpop.f32.mrb[3].mxu1  ;;  %205 = vst.msk [vmem:[#allocation2] sm:$0xff] %vm204_vm2, %v199_v23 }
 0x1ba   :  { %297 = shalt.err (!%p294_p4)
}
 0x1bb   :  { %s298_s4 = scalar_lea.hbm %s399_s5, 128 }
 0x1bc   :  { %p299_p5 = scmp.ne.s32.totalorder %s399_s5, %s298_s4  ;;  %p302_p6 = scmp.lt.u32.totalorder %s298_s4, %s399_s5 }
 0x1be   :  { %p304_p7 = pnand %p302_p6, %p299_p5 }
 0x1c0   :  { %307 = shalt.err (!%p304_p7)
}
 0x1c1   :  { %215 = dma.vmem_to_hbm [thread:$0]  %s213_s18, 128, %s399_s5, [#allocation3]  }
 0x1c2   :  { %308 = dma.done.wait [#allocation3], 128  }
 0x1c3   :  { %309 = vsyncadd [#allocation3], 4294967168 }
 0x1c4   :  { %219 = vsyncpa [#allocation3], 1 }

</bundles_post_ra>
